<compile_context>
chip_gen: v6e
topology: v6e:2x2x1
jax: 0.10.0
libtpu: 0.0.40
codegen_flags: <defaults>
</compile_context>

<pallas_src>
import jax
import jax.numpy as jnp
from jax.experimental import pallas as pl
from jax.experimental.pallas import tpu as pltpu


def _pick_row_tile(h, wc, itemsize, sub):
    """Largest multiple-of-`sub` divisor of `h` whose input tile is <= ~1 MiB,
    while keeping at least two row tiles (when h > sub) so the grid has enough
    steps for pipelining and TensorCore sharding."""
    budget = 1 << 20
    cap = h if h <= sub else h // 2
    best = sub
    t = sub
    while t <= h:
        if h % t == 0 and t <= cap and t * wc * itemsize <= budget:
            best = t
        t += sub
    return best


def _make_dwconv_kernel(TH, C, WC, SUB):
    """Row-tile kernel. Refs per grid step (b, i):
      x_ref:   (1, TH, WC)   main rows of the lane-packed image (input dtype)
      top_ref: (1, SUB, WC)  aligned slab containing the row above the tile
      bot_ref: (1, SUB, WC)  aligned slab containing the row below the tile
      w_ref:   (9, WC)       depthwise weights (row = dy*3+dx) tiled across W
      b_ref:   (1, WC)       bias tiled across W
      o_ref:   (1, TH, WC)   output rows
      xpad_ref:(TH+2, WC)    VMEM scratch holding the vertically-haloed tile
    """

    def kernel(x_ref, top_ref, bot_ref, w_ref, b_ref, o_ref, xpad_ref):
        i = pl.program_id(1)
        n_i = pl.num_programs(1)
        dt = x_ref.dtype

        # Vertical halo rows (zero at the image top/bottom edges).
        top_row = top_ref[0][SUB - 1:SUB, :] * (i > 0).astype(dt)          # row i*TH - 1
        bot_row = bot_ref[0][0:1, :] * (i < n_i - 1).astype(dt)            # row (i+1)*TH

        # Assemble the (TH+2, WC) vertically-padded tile in VMEM scratch,
        # keeping the input dtype (no whole-tile f32 upcast).
        xpad_ref[0:1, :] = top_row
        xpad_ref[1:TH + 1, :] = x_ref[0]
        xpad_ref[TH + 1:TH + 2, :] = bot_row
        xc = xpad_ref[...]                                                  # (TH+2, WC)

        # Horizontal (dx) shift by one pixel == C lanes, built once from static
        # lane slices + a zero column block (boundary pixels see zero padding)
        # and reused across the three dy rows.
        zc = jnp.zeros((TH + 2, C), dtype=xc.dtype)
        xl = jnp.concatenate([zc, xc[:, :WC - C]], axis=1)                  # reads pixel x-1
        xr = jnp.concatenate([xc[:, C:], zc], axis=1)                       # reads pixel x+1
        shifted = (xl, xc, xr)                                              # indexed by dx

        w = w_ref[...].astype(jnp.float32)                                  # (9, WC)
        # Start the accumulator at the (broadcast) bias: saves a final add pass.
        acc = jnp.broadcast_to(b_ref[...].astype(jnp.float32), (TH, WC))
        for dy in range(3):
            for dx in range(3):
                tap = shifted[dx][dy:dy + TH, :].astype(jnp.float32)
                acc = acc + tap * w[dy * 3 + dx:dy * 3 + dx + 1, :]
        o_ref[0] = acc.astype(o_ref.dtype)

    return kernel


def dwconv(x, weight, bias, h, w):
    """Depthwise 3x3 conv (stride 1, pad 1, groups=C, bias) on token-layout input.

    x: (B, N, C) with N == h*w; weight: (3, 3, C) (torch (C,1,3,3) -> squeeze(1)
    -> permute(1,2,0)); bias: (C,). Returns (B, N, C).
    """
    B, N, C = x.shape
    assert N == h * w, (N, h, w)
    WC = w * C
    itemsize = x.dtype.itemsize
    SUB = 8 * max(1, 4 // itemsize)  # sublane packing: 8 (f32) / 16 (bf16) / 32 (int8)
    # TODO(synk): heights not divisible by the sublane packing need an
    # unaligned-halo fallback; SegFormer stage resolutions always satisfy this.
    assert h % SUB == 0, f"h={h} must be a multiple of {SUB} for row tiling"

    TH = _pick_row_tile(h, WC, itemsize, SUB)
    nH = h // TH
    th_s = TH // SUB          # row-tile height measured in SUB-row slabs
    nHs = h // SUB            # number of SUB-row slabs in the image

    # Free (contiguous) reshape to the lane-dense packed layout (B, H, W*C).
    x_img = x.reshape(B, h, WC)
    # Per-tap weights / bias tiled across W so they broadcast over packed lanes.
    w9 = jnp.tile(weight.reshape(9, C), (1, w)).astype(jnp.float32)   # (9, W*C)
    b2 = jnp.tile(bias.reshape(1, C), (1, w)).astype(jnp.float32)     # (1, W*C)

    kernel = _make_dwconv_kernel(TH, C, WC, SUB)

    out = pl.pallas_call(
        kernel,
        out_shape=jax.ShapeDtypeStruct((B, h, WC), x.dtype),
        grid_spec=pltpu.PrefetchScalarGridSpec(
            num_scalar_prefetch=0,
            grid=(B, nH),
            in_specs=[
                # Main row tile.
                pl.BlockSpec((1, TH, WC), lambda b, i: (b, i, 0)),
                # SUB-row slab holding the row just above the tile (clamped at
                # the top edge; the kernel zero-masks it when i == 0).
                pl.BlockSpec((1, SUB, WC),
                             lambda b, i: (b, jnp.maximum(i * th_s - 1, 0), 0)),
                # SUB-row slab holding the row just below the tile (clamped at
                # the bottom edge; zero-masked when i == nH - 1).
                pl.BlockSpec((1, SUB, WC),
                             lambda b, i: (b, jnp.minimum((i + 1) * th_s, nHs - 1), 0)),
                pl.BlockSpec((9, WC), lambda b, i: (0, 0)),
                pl.BlockSpec((1, WC), lambda b, i: (0, 0)),
            ],
            out_specs=pl.BlockSpec((1, TH, WC), lambda b, i: (b, i, 0)),
            scratch_shapes=[pltpu.VMEM((TH + 2, WC), x.dtype)],
        ),
        compiler_params=pltpu.CompilerParams(
            # Every (b, row-tile) step is independent -> shard across megacore /
            # both v7x TensorCores and pipeline freely.
            dimension_semantics=("parallel", "parallel"),
            # Explicit VMEM budget, well under v7x's 64 MiB physical VMEM.
            vmem_limit_bytes=48 * 1024 * 1024,
        ),
    )(x_img, x_img, x_img, w9, b2)

    return out.reshape(B, N, C)


def _reference_dwconv(x, weight, bias, h, w):
    """Pure-JAX reference using lax.conv_general_dilated (depthwise)."""
    B, N, C = x.shape
    x_img = x.reshape(B, h, w, C)
    rhs = weight.reshape(3, 3, 1, C)  # HWIO with I=1, feature_group_count=C
    out = jax.lax.conv_general_dilated(
        x_img, rhs, window_strides=(1, 1), padding=((1, 1), (1, 1)),
        dimension_numbers=("NHWC", "HWIO", "NHWC"), feature_group_count=C)
    out = out + bias[None, None, None, :]
    return out.reshape(B, N, C)


if __name__ == "__main__":
    # Small shapes: batch=2, dim(C)=8, spatial h=w=16 -> seq N=256, W*C=128
    # (fully lane-dense blocks).
    B, C, H, W = 2, 8, 16, 16
    N = H * W

    key = jax.random.PRNGKey(0)
    kx, kw, kb = jax.random.split(key, 3)

    x = jax.random.normal(kx, (B, N, C), dtype=jnp.float32)
    # torch Conv2d weight shape is (C, 1, 3, 3); we store it as (3, 3, C)
    weight = jax.random.normal(kw, (3, 3, C), dtype=jnp.float32) * 0.1
    bias = jax.random.normal(kb, (C,), dtype=jnp.float32) * 0.1

    out = jax.block_until_ready(dwconv(x, weight, bias, H, W))

    ref = _reference_dwconv(x, weight, bias, H, W)
    if not jnp.allclose(out, ref, atol=1e-5, rtol=1e-5):
        err = float(jnp.max(jnp.abs(out - ref)))
        raise AssertionError(f"Pallas DWConv does not match reference (max err {err})")

    print("KERNEL_OK")
</pallas_src>

<mosaic_0001>
module attributes {stable_mosaic.version = 11 : i64} {
  func.func @kernel(%arg0: i32, %arg1: i32, %arg2: memref<1x8x128xf32, #tpu.memory_space<vmem>>, %arg3: memref<1x8x128xf32, #tpu.memory_space<vmem>>, %arg4: memref<1x8x128xf32, #tpu.memory_space<vmem>>, %arg5: memref<9x128xf32, #tpu.memory_space<vmem>>, %arg6: memref<1x128xf32, #tpu.memory_space<vmem>>, %arg7: memref<1x8x128xf32, #tpu.memory_space<vmem>>, %arg8: memref<10x128xf32, #tpu.memory_space<vmem>>) attributes {dimension_semantics = [#tpu.dimension_semantics<parallel>, #tpu.dimension_semantics<parallel>], iteration_bounds = array<i64: 2, 2>, scalar_prefetch = 0 : i64, scratch_operands = 1 : i64, tpu.core_type = #tpu.core_type<tc>, window_params = [{transform_indices = @transform_0, window_bounds = array<i64: 1, 8, 128>}, {transform_indices = @transform_1, window_bounds = array<i64: 1, 8, 128>}, {transform_indices = @transform_2, window_bounds = array<i64: 1, 8, 128>}, {pipeline_mode = #tpu.pipeline_mode<synchronous>, transform_indices = @transform_3, window_bounds = array<i64: 9, 128>}, {pipeline_mode = #tpu.pipeline_mode<synchronous>, transform_indices = @transform_4, window_bounds = array<i64: 1, 128>}, {transform_indices = @transform_5, window_bounds = array<i64: 1, 8, 128>}]} {
    %c0 = arith.constant 0 : index
    %c0_0 = arith.constant 0 : index
    %c0_1 = arith.constant 0 : index
    %0 = vector.load %arg3[%c0, %c0_0, %c0_1] : memref<1x8x128xf32, #tpu.memory_space<vmem>>, vector<1x8x128xf32>
    %1 = vector.shape_cast %0 : vector<1x8x128xf32> to vector<8x128xf32>
    %2 = vector.extract_strided_slice %1 {offsets = [7, 0], sizes = [1, 128], strides = [1, 1]} : vector<8x128xf32> to vector<1x128xf32>
    %c0_i32 = arith.constant 0 : i32
    %3 = arith.cmpi sgt, %arg1, %c0_i32 : i32
    %4 = arith.extui %3 : i1 to i32
    %5 = arith.sitofp %4 : i32 to f32
    %6 = vector.broadcast %5 : f32 to vector<1x128xf32>
    %7 = arith.mulf %2, %6 : vector<1x128xf32>
    %c0_2 = arith.constant 0 : index
    %c0_3 = arith.constant 0 : index
    %c0_4 = arith.constant 0 : index
    %8 = vector.load %arg4[%c0_2, %c0_3, %c0_4] : memref<1x8x128xf32, #tpu.memory_space<vmem>>, vector<1x8x128xf32>
    %9 = vector.shape_cast %8 : vector<1x8x128xf32> to vector<8x128xf32>
    %10 = vector.extract_strided_slice %9 {offsets = [0, 0], sizes = [1, 128], strides = [1, 1]} : vector<8x128xf32> to vector<1x128xf32>
    %c1_i32 = arith.constant 1 : i32
    %11 = arith.cmpi slt, %arg1, %c1_i32 : i32
    %12 = arith.extui %11 : i1 to i32
    %13 = arith.sitofp %12 : i32 to f32
    %14 = vector.broadcast %13 : f32 to vector<1x128xf32>
    %15 = arith.mulf %10, %14 : vector<1x128xf32>
    %c0_5 = arith.constant 0 : index
    %c0_6 = arith.constant 0 : index
    %16 = vector.load %arg8[%c0_5, %c0_6] : memref<10x128xf32, #tpu.memory_space<vmem>>, vector<1x128xf32>
    tpu.vector_store %arg8[%c0_5, %c0_6], %7 {strides = array<i32>} : memref<10x128xf32, #tpu.memory_space<vmem>>, vector<1x128xf32>,
    %c0_7 = arith.constant 0 : index
    %c0_8 = arith.constant 0 : index
    %c0_9 = arith.constant 0 : index
    %17 = vector.load %arg2[%c0_7, %c0_8, %c0_9] : memref<1x8x128xf32, #tpu.memory_space<vmem>>, vector<1x8x128xf32>
    %18 = vector.shape_cast %17 : vector<1x8x128xf32> to vector<8x128xf32>
    %c1 = arith.constant 1 : index
    %c0_10 = arith.constant 0 : index
    %19 = vector.load %arg8[%c1, %c0_10] : memref<10x128xf32, #tpu.memory_space<vmem>>, vector<8x128xf32>
    tpu.vector_store %arg8[%c1, %c0_10], %18 {strides = array<i32>} : memref<10x128xf32, #tpu.memory_space<vmem>>, vector<8x128xf32>,
    %c9 = arith.constant 9 : index
    %c0_11 = arith.constant 0 : index
    %20 = vector.load %arg8[%c9, %c0_11] : memref<10x128xf32, #tpu.memory_space<vmem>>, vector<1x128xf32>
    tpu.vector_store %arg8[%c9, %c0_11], %15 {strides = array<i32>} : memref<10x128xf32, #tpu.memory_space<vmem>>, vector<1x128xf32>,
    %c0_12 = arith.constant 0 : index
    %c0_13 = arith.constant 0 : index
    %21 = vector.load %arg8[%c0_12, %c0_13] : memref<10x128xf32, #tpu.memory_space<vmem>>, vector<10x128xf32>
    %cst = arith.constant 0.000000e+00 : f32
    %22 = vector.broadcast %cst : f32 to vector<10x8xf32>
    %23 = vector.extract_strided_slice %21 {offsets = [0, 0], sizes = [10, 120], strides = [1, 1]} : vector<10x128xf32> to vector<10x120xf32>
    %24 = tpu.concatenate %22, %23 in 1 : vector<10x8xf32>, vector<10x120xf32> -> vector<10x128xf32>
    %25 = vector.extract_strided_slice %21 {offsets = [0, 8], sizes = [10, 120], strides = [1, 1]} : vector<10x128xf32> to vector<10x120xf32>
    %26 = tpu.concatenate %25, %22 in 1 : vector<10x120xf32>, vector<10x8xf32> -> vector<10x128xf32>
    %c0_14 = arith.constant 0 : index
    %c0_15 = arith.constant 0 : index
    %27 = vector.load %arg5[%c0_14, %c0_15] : memref<9x128xf32, #tpu.memory_space<vmem>>, vector<9x128xf32>
    %c0_16 = arith.constant 0 : index
    %c0_17 = arith.constant 0 : index
    %28 = vector.load %arg6[%c0_16, %c0_17] : memref<1x128xf32, #tpu.memory_space<vmem>>, vector<1x128xf32>
    %29 = vector.shape_cast %28 : vector<1x128xf32> to vector<1x128xf32>
    %30 = vector.broadcast %29 : vector<1x128xf32> to vector<8x128xf32>
    %31 = vector.extract_strided_slice %24 {offsets = [0, 0], sizes = [8, 128], strides = [1, 1]} : vector<10x128xf32> to vector<8x128xf32>
    %32 = vector.extract_strided_slice %27 {offsets = [0, 0], sizes = [1, 128], strides = [1, 1]} : vector<9x128xf32> to vector<1x128xf32>
    %33 = vector.broadcast %32 : vector<1x128xf32> to vector<8x128xf32>
    %34 = arith.mulf %31, %33 : vector<8x128xf32>
    %35 = arith.addf %30, %34 : vector<8x128xf32>
    %36 = vector.extract_strided_slice %21 {offsets = [0, 0], sizes = [8, 128], strides = [1, 1]} : vector<10x128xf32> to vector<8x128xf32>
    %37 = vector.extract_strided_slice %27 {offsets = [1, 0], sizes = [1, 128], strides = [1, 1]} : vector<9x128xf32> to vector<1x128xf32>
    %38 = vector.broadcast %37 : vector<1x128xf32> to vector<8x128xf32>
    %39 = arith.mulf %36, %38 : vector<8x128xf32>
    %40 = arith.addf %35, %39 : vector<8x128xf32>
    %41 = vector.extract_strided_slice %26 {offsets = [0, 0], sizes = [8, 128], strides = [1, 1]} : vector<10x128xf32> to vector<8x128xf32>
    %42 = vector.extract_strided_slice %27 {offsets = [2, 0], sizes = [1, 128], strides = [1, 1]} : vector<9x128xf32> to vector<1x128xf32>
    %43 = vector.broadcast %42 : vector<1x128xf32> to vector<8x128xf32>
    %44 = arith.mulf %41, %43 : vector<8x128xf32>
    %45 = arith.addf %40, %44 : vector<8x128xf32>
    %46 = vector.extract_strided_slice %24 {offsets = [1, 0], sizes = [8, 128], strides = [1, 1]} : vector<10x128xf32> to vector<8x128xf32>
    %47 = vector.extract_strided_slice %27 {offsets = [3, 0], sizes = [1, 128], strides = [1, 1]} : vector<9x128xf32> to vector<1x128xf32>
    %48 = vector.broadcast %47 : vector<1x128xf32> to vector<8x128xf32>
    %49 = arith.mulf %46, %48 : vector<8x128xf32>
    %50 = arith.addf %45, %49 : vector<8x128xf32>
    %51 = vector.extract_strided_slice %21 {offsets = [1, 0], sizes = [8, 128], strides = [1, 1]} : vector<10x128xf32> to vector<8x128xf32>
    %52 = vector.extract_strided_slice %27 {offsets = [4, 0], sizes = [1, 128], strides = [1, 1]} : vector<9x128xf32> to vector<1x128xf32>
    %53 = vector.broadcast %52 : vector<1x128xf32> to vector<8x128xf32>
    %54 = arith.mulf %51, %53 : vector<8x128xf32>
    %55 = arith.addf %50, %54 : vector<8x128xf32>
    %56 = vector.extract_strided_slice %26 {offsets = [1, 0], sizes = [8, 128], strides = [1, 1]} : vector<10x128xf32> to vector<8x128xf32>
    %57 = vector.extract_strided_slice %27 {offsets = [5, 0], sizes = [1, 128], strides = [1, 1]} : vector<9x128xf32> to vector<1x128xf32>
    %58 = vector.broadcast %57 : vector<1x128xf32> to vector<8x128xf32>
    %59 = arith.mulf %56, %58 : vector<8x128xf32>
    %60 = arith.addf %55, %59 : vector<8x128xf32>
    %61 = vector.extract_strided_slice %24 {offsets = [2, 0], sizes = [8, 128], strides = [1, 1]} : vector<10x128xf32> to vector<8x128xf32>
    %62 = vector.extract_strided_slice %27 {offsets = [6, 0], sizes = [1, 128], strides = [1, 1]} : vector<9x128xf32> to vector<1x128xf32>
    %63 = vector.broadcast %62 : vector<1x128xf32> to vector<8x128xf32>
    %64 = arith.mulf %61, %63 : vector<8x128xf32>
    %65 = arith.addf %60, %64 : vector<8x128xf32>
    %66 = vector.extract_strided_slice %21 {offsets = [2, 0], sizes = [8, 128], strides = [1, 1]} : vector<10x128xf32> to vector<8x128xf32>
    %67 = vector.extract_strided_slice %27 {offsets = [7, 0], sizes = [1, 128], strides = [1, 1]} : vector<9x128xf32> to vector<1x128xf32>
    %68 = vector.broadcast %67 : vector<1x128xf32> to vector<8x128xf32>
    %69 = arith.mulf %66, %68 : vector<8x128xf32>
    %70 = arith.addf %65, %69 : vector<8x128xf32>
    %71 = vector.extract_strided_slice %26 {offsets = [2, 0], sizes = [8, 128], strides = [1, 1]} : vector<10x128xf32> to vector<8x128xf32>
    %72 = vector.extract_strided_slice %27 {offsets = [8, 0], sizes = [1, 128], strides = [1, 1]} : vector<9x128xf32> to vector<1x128xf32>
    %73 = vector.broadcast %72 : vector<1x128xf32> to vector<8x128xf32>
    %74 = arith.mulf %71, %73 : vector<8x128xf32>
    %75 = arith.addf %70, %74 : vector<8x128xf32>
    %c0_18 = arith.constant 0 : index
    %c0_19 = arith.constant 0 : index
    %c0_20 = arith.constant 0 : index
    %76 = vector.load %arg7[%c0_18, %c0_19, %c0_20] : memref<1x8x128xf32, #tpu.memory_space<vmem>>, vector<1x8x128xf32>
    %77 = vector.shape_cast %76 : vector<1x8x128xf32> to vector<8x128xf32>
    %78 = vector.shape_cast %75 : vector<8x128xf32> to vector<1x8x128xf32>
    tpu.vector_store %arg7[%c0_18, %c0_19, %c0_20], %78 {strides = array<i32>} : memref<1x8x128xf32, #tpu.memory_space<vmem>>, vector<1x8x128xf32>,
    return
  }
  func.func @transform_0(%arg0: i32, %arg1: i32) -> (i32, i32, i32) {
    %c0_i32 = arith.constant 0 : i32
    %c0_i32_0 = arith.constant 0 : i32
    return %arg0, %arg1, %c0_i32 : i32, i32, i32
  }
  func.func @transform_1(%arg0: i32, %arg1: i32) -> (i32, i32, i32) {
    %c1_i32 = arith.constant 1 : i32
    %0 = arith.muli %arg1, %c1_i32 : i32
    %c1_i32_0 = arith.constant 1 : i32
    %1 = arith.subi %0, %c1_i32_0 : i32
    %c0_i32 = arith.constant 0 : i32
    %2 = arith.maxsi %1, %c0_i32 : i32
    %c0_i32_1 = arith.constant 0 : i32
    %c0_i32_2 = arith.constant 0 : i32
    return %arg0, %2, %c0_i32_1 : i32, i32, i32
  }
  func.func @transform_2(%arg0: i32, %arg1: i32) -> (i32, i32, i32) {
    %c1_i32 = arith.constant 1 : i32
    %0 = arith.addi %arg1, %c1_i32 : i32
    %c1_i32_0 = arith.constant 1 : i32
    %1 = arith.muli %0, %c1_i32_0 : i32
    %c1_i32_1 = arith.constant 1 : i32
    %2 = arith.minsi %1, %c1_i32_1 : i32
    %c0_i32 = arith.constant 0 : i32
    %c0_i32_2 = arith.constant 0 : i32
    return %arg0, %2, %c0_i32 : i32, i32, i32
  }
  func.func @transform_3(%arg0: i32, %arg1: i32) -> (i32, i32) {
    %c0_i32 = arith.constant 0 : i32
    %c0_i32_0 = arith.constant 0 : i32
    %c0_i32_1 = arith.constant 0 : i32
    return %c0_i32, %c0_i32_0 : i32, i32
  }
  func.func @transform_4(%arg0: i32, %arg1: i32) -> (i32, i32) {
    %c0_i32 = arith.constant 0 : i32
    %c0_i32_0 = arith.constant 0 : i32
    %c0_i32_1 = arith.constant 0 : i32
    return %c0_i32, %c0_i32_0 : i32, i32
  }
  func.func @transform_5(%arg0: i32, %arg1: i32) -> (i32, i32, i32) {
    %c0_i32 = arith.constant 0 : i32
    %c0_i32_0 = arith.constant 0 : i32
    return %arg0, %arg1, %c0_i32 : i32, i32, i32
  }
}

</mosaic_0001>

<bundles_post_ra>
// kernel: tpu_custom_call.1
= control target key start
LH: loop header
LB: loop body
LE: loop exit
PB: predicated region body
PF: predicated region fallthrough
CT: control target
= control target key end

     0   :  { %s1531_s0 = inlined_call_operand.hbm [shape: f32[2,16,128], index: 0, kind: input, shape index: {}]   ;;  %s1532_s1 = inlined_call_operand.hbm [shape: f32[2,16,128], index: 1, kind: input, shape index: {}]   ;;  %s1533_s2 = inlined_call_operand.hbm [shape: f32[2,16,128], index: 2, kind: input, shape index: {}]   ;;  %s1534_s3 = inlined_call_operand.hbm [shape: f32[9,128], index: 3, kind: input, shape index: {}]   ;;  %s1535_s4 = inlined_call_operand.vmem [shape: f32[1,128], index: 4, kind: input, shape index: {}]   ;;  %s1536_s5 = inlined_call_operand.hbm [shape: f32[2,16,128], index: 5, kind: output, shape index: {}]  }
   0x1   :  { %1554 = sst [smem:[#allocation26_spill]] %s1532_s1 }
   0x2   :  { %1555 = sst [smem:[#allocation27_spill]] %s1534_s3 }
   0x3   :  { %1556 = sst [smem:[#allocation28_spill]] %s1535_s4 }
   0x4   :  { %1557 = sst [smem:[#allocation29_spill]] %s1536_s5 }
   0x5   :  { %10 = vsyncpa [#allocation4], 0 }
   0x6   :  { %12 = vsyncpa [#allocation4 + $0x1], 0 }
   0x7   :  { %13 = vsyncpa [#allocation7], 0 }
   0x8   :  { %15 = vsyncpa [#allocation7 + $0x1], 0 }
   0x9   :  { %16 = vsyncpa [#allocation10], 0 }
   0xa   :  { %17 = vsyncpa [#allocation5], 0 }
   0xb   :  { %19 = vsyncpa [#allocation5 + $0x1], 0  ;;  %s1172_s18 = smov 0   ;;  %s1174_s19 = smov 0  }
   0xc   :  { %s1176_s20 = smov 0   ;;  %s1178_s21 = smov 0  }
   0xd   :  { %s1180_s22 = smov 0   ;;  %s1182_s23 = smov 0  }
   0xe   :  { %s1184_s24 = smov 0   ;;  %s1186_s25 = smov 0  }
   0xf   :  { %s1188_s26 = smov 0   ;;  %s1190_s27 = smov 0  }
  0x10   :  { %s1192_s28 = smov 0   ;;  %s1194_s29 = smov 0  }
  0x11   :  { %s1196_s30 = smov 0   ;;  %s1198_s6 = smov 0  }
  0x12 LB: > { %1558 = sst [smem:[#allocation17_spill]] %s1095_s22  ;;  %s1241_s7 = sadd.s32 4294967295, %s1131_s6   ;;  %s1131_s6 = sphi %s1198_s6, %s25_s6   ;;  %s1127_s30 = sphi %s1196_s30, %s1621_s30   ;;  %s1123_s29 = sphi %s1194_s29, %s1620_s29   ;;  %s1119_s28 = sphi %s1192_s28, %s1619_s28   ;;  %s1115_s27 = sphi %s1190_s27, %s1618_s27   ;;  %s1111_s26 = sphi %s1188_s26, %s1608_s26   ;;  %s1107_s25 = sphi %s1186_s25, %s1617_s25   ;;  %s1103_s24 = sphi %s1184_s24, %s1616_s24   ;;  %s1099_s23 = sphi %s1182_s23, %s1615_s23   ;;  %s1095_s22 = sphi %s1180_s22, %s1614_s22   ;;  %s1091_s21 = sphi %s1178_s21, %s1605_s21   ;;  %s1087_s20 = sphi %s1176_s20, %s1613_s20   ;;  %s1083_s19 = sphi %s1174_s19, %s1612_s19   ;;  %s1079_s18 = sphi %s1172_s18, %s1611_s18  }
  0x13   : > { %1559 = sst [smem:[#allocation18_spill]] %s1111_s26  ;;  %s34_s8 = sadd.s32 1, %s1123_s29 }
  0x14   : > { %1560 = sst [smem:[#allocation19_spill]] %s1115_s27  ;;  %p35_p0 = scmp.ge.s32.totalorder %s34_s8, 2 }
  0x15   : > { %1561 = sst [smem:[#allocation20_spill]] %s1119_s28  ;;  %s37_s9 = sadd.s32 1, %s1127_s30 }
  0x16   : > { %p1546_p1 = scmp.eq.s32.totalorder %s1131_s6, 0  ;;  %p1547_p2 = scmp.eq.s32.totalorder %s1241_s7, 0 }
  0x17   : > { %s1623_s8 = smov (%p35_p0, %s34_s8), 0  ;;  %s1625_s9 = smov (!%p35_p0, %s37_s9), %s1127_s30 }
  0x18   : > { %1562 = sst [smem:[#allocation21_spill]] %s1623_s8  ;;  %s42_s10 = ssub.s32 %s1123_s29, %s1623_s8 }
  0x19   : > { %p39_p3 = scmp.ge.s32.totalorder %s1625_s9, 2  ;;  %s80_s11 = sadd.s32 1, %s1099_s23 }
  0x1a   : > { %p87_p4 = scmp.ne.s32.totalorder %s1099_s23, %s1095_s22  ;;  %p93_p6 = scmp.ne.s32.totalorder %s1095_s22, %s1091_s21 }
  0x1b   : > { %s1627_s9 = smov (%p39_p3, %s1625_s9), 0  ;;  %p1545_p10 = scmp.lt.s32.totalorder %s1131_s6, 4 }
  0x1c   : > { %1563 = sst [smem:[#allocation22_spill]] %s1627_s9  ;;  %s1257_s12 = ssub.s32 %s1127_s30, %s1627_s9 }
  0x1d   : > { %s1260_s13 = sor.u32 %s42_s10, %s1257_s12  ;;  %p1268_p7 = por %p87_p4, %p1546_p1 }
  0x1e   : > { %p1274_p8 = por %p93_p6, %p1547_p2  ;;  %p1544_p9 = scmp.eq.s32.totalorder %s1257_s12, 0 }
  0x1f   : > { %s257_s17 = sand.u32 1, %s1131_s6   ;;  %s259_s9 = sand.u32 1, %s1099_s23  }
  0x20   : > { %s1565_s15 = scalar_select %p1274_p8, 1, 0 }
  0x21   : > { %s1285_s10 = scalar_select %p1544_p9, %s1099_s23, %s80_s11  }
  0x22   : > { %1566 = sst [smem:[#allocation23_spill]] %s1565_s15  ;;  %s690_s21 = sshll.u32 %s259_s9, 3 }
  0x23   : > { %1567 = sst [smem:[#allocation24_spill]] %s1285_s10  ;;  %s1549_s8 = sshll.u32 %s1127_s30, 8 }
  0x24   : > { %s1568_s1 = sld [smem:[#allocation26_spill]]  ;;  %s261_s27 = scalar_lea.vmem [#allocation6], %s690_s21 }
  0x25   : > { %s273_s22 = sshll.u32 %s261_s27, 4  ;;  %p1298_p11 = pnand %p1545_p10, %p1268_p7  ;;  %s274_s22 = int_to_ptr.vmem [resolvable:$true] %s273_s22 }
  0x26   : > { %s1302_s11 = scalar_lea.sflag [#allocation7], %s257_s17 }
  0x27   : > { %p863_p13 = pneg %p1298_p11 }
  0x2a   : > { %s271_s4 = scalar_lea.hbm %s1568_s1, %s1549_s8 }
  0x2b   : > { %s861_s16 = scalar_lea.hbm %s271_s4, 128  ;;  %p867_p4 = scmp.lt.s32.totalorder %s271_s4, %s1568_s1 }
  0x2c   : > { %p862_p12 = scmp.ne.s32.totalorder %s271_s4, %s861_s16 }
  0x2e   : > { %p864_p0 = pnand %p863_p13, %p862_p12 }
  0x30   : > { %p865_p3 = pneg %p864_p0 }
  0x32   : > { %p870_p6 = pnand %p867_p4, %p865_p3 }
  0x34   : > { %873 = shalt.err (!%p870_p6)
}
  0x35   : > { %s874_s27 = scalar_lea.vmem %s274_s22, 128  ;;  %s1133_s9 = smov [#allocation6]  }
  0x36   : > { %p875_p7 = scmp.ne.s32.totalorder %s274_s22, %s874_s27  ;;  %s879_s14 = sshll.u32 %s1133_s9, 4  ;;  %s880_s14 = int_to_ptr.vmem [resolvable:$false] %s879_s14 }
  0x37   : > { %s881_s17 = scalar_lea.vmem %s880_s14, 256  ;;  %p882_p1 = scmp.lt.s32.totalorder %s274_s22, %s880_s14 }
  0x38   : > { %p877_p9 = pnand %p875_p7, %p863_p13  ;;  %p883_p5 = scmp.lt.s32.totalorder %s881_s17, %s874_s27 }
  0x3a   : > { %p878_p10 = pneg %p877_p9  ;;  %p884_p2 = por %p883_p5, %p882_p1 }
  0x3c   : > { %p885_p8 = pnand %p884_p2, %p878_p10 }
  0x3e   : > { %888 = shalt.err (!%p885_p8)
}
  0x3f   : > { %732 = dma.hbm_to_vmem [thread:$0]  (!%p1298_p11), %s271_s4, 128, %s274_s22, %s1302_s11  }
  0x40   : > { %p684_p12 = scmp.ge.s32.totalorder %s1131_s6, 1  ;;  %p208_p9 = scmp.lt.s32.totalorder %s1131_s6, 5 }
  0x41   : > { %s1134_s16 = smov [#allocation9]   ;;  %p1571_p2 = scmp.eq.s32.totalorder %s1241_s7, 0 }
  0x42   : > { %s220_s21 = sshll.u32 %s1134_s16, 4  ;;  %p1314_p13 = pnand %p684_p12, %p208_p9  ;;  %s221_s21 = int_to_ptr.vmem [resolvable:$true] %s220_s21 }
  0x43   : > { %s681_s28 = sadd.s32 4294967294, %s1131_s6   ;;  %s46_s4 = sadd.s32 1, %s1111_s26 }
  0x44   : > { %p722_p1 = pneg %p1314_p13  ;;  %s900_s22 = scalar_lea.vmem %s221_s21, 256 }
  0x45   : > { %p901_p10 = scmp.ne.s32.totalorder %s221_s21, %s900_s22  ;;  %p908_p3 = scmp.lt.s32.totalorder %s221_s21, %s221_s21 }
  0x46   : > { %p1322_p5 = pnand %p722_p1, %p1571_p2  ;;  %p909_p4 = scmp.lt.s32.totalorder %s900_s22, %s900_s22 }
  0x48   : > { %p891_p8 = pneg %p1322_p5  ;;  %p910_p6 = por %p909_p4, %p908_p3 }
  0x4a   : > { %p903_p11 = pnand %p901_p10, %p891_p8 }
  0x4c   : > { %p904_p0 = pneg %p903_p11 }
  0x4e   : > { %p911_p7 = pnand %p910_p6, %p904_p0 }
  0x50   : > { %914 = shalt.err (!%p911_p7)
}
  0x51   : > { %s1135_s27 = smov 128   ;;  %s1136_s9 = smov 8  }
  0x52   : > { %s1573_s3 = sld [smem:[#allocation27_spill]]  ;;  %p1574_p12 = scmp.eq.s32.totalorder %s1260_s13, 0 }
  0x53   : > { %p53_p9 = scmp.ne.s32.totalorder %s1111_s26, %s1107_s25  ;;  %p59_p1 = scmp.ne.s32.totalorder %s1107_s25, %s1103_s24 }
  0x54   : > { %s1338_s16 = scalar_select %p1574_p12, %s1111_s26, %s46_s4  }
  0x55   : > { %p195_p2 = scmp.eq.s32.totalorder %s1241_s7, 3  ;;  %p201_p8 = scmp.eq.s32.totalorder %s681_s28, 3 }
  0x56   : > { %1575 = sst [smem:[#allocation25_spill]] %s1338_s16  ;;  %p1576_p10 = scmp.eq.s32.totalorder %s1131_s6, 0 }
  0x57   : > { %p1577_p0 = scmp.eq.s32.totalorder %s1241_s7, 0  ;;  %p1353_p4 = por %p195_p2, %p53_p9 }
  0x58   : > { %725 = dma.hbm_to_vmem [thread:$0]  (!%p1322_p5), %s1573_s3, 256, %s221_s21, [#allocation10], %s1135_s27, %s1135_s27, %s1136_s9  }
  0x59   : > { %p55_p11 = por %p1576_p10, %p53_p9  ;;  %p1349_p3 = por %p1577_p0, %p59_p1 }
  0x5a   : > { %s1579_s15 = scalar_select %p1353_p4, 1, 0 }
  0x5b   : > { %s1578_s22 = scalar_select %p1349_p3, 1, 0 }
  0x5c   : > { %p1357_p5 = por %p201_p8, %p59_p1  ;;  %s237_s21 = sand.u32 1, %s1111_s26  }
  0x5d   : > { %s1581_s4 = sshll.u32 %s1127_s30, 1  ;;  %s687_s9 = sshll.u32 %s237_s21, 3 }
  0x5e   : > { %s1580_s13 = scalar_select %p1357_p5, 1, 0 }
  0x5f   : > { %s246_s27 = sadd.s32 %s1123_s29, %s1581_s4  ;;  %s241_s1 = scalar_lea.vmem [#allocation3], %s687_s9 }
  0x60   : > { %s689_s28 = sshll.u32 %s246_s27, 7  ;;  %s250_s3 = sshll.u32 %s241_s1, 4  ;;  %s251_s3 = int_to_ptr.vmem [resolvable:$true] %s250_s3 }
  0x61   : > { %s248_s8 = scalar_lea.hbm %s1531_s0, %s689_s28  ;;  %p1582_p6 = scmp.lt.s32.totalorder %s1131_s6, 4 }
  0x62   : > { %s238_s10 = scalar_lea.sflag [#allocation4], %s237_s21  ;;  %s928_s26 = scalar_lea.vmem %s251_s3, 128 }
  0x63   : > { %p1370_p7 = pnand %p1582_p6, %p55_p11  ;;  %p929_p9 = scmp.ne.s32.totalorder %s251_s3, %s928_s26 }
  0x64   : > { %s1137_s4 = smov [#allocation3]  }
  0x65   : > { %p917_p12 = pneg %p1370_p7  ;;  %s933_s27 = sshll.u32 %s1137_s4, 4  ;;  %s934_s27 = int_to_ptr.vmem [resolvable:$false] %s933_s27 }
  0x66   : > { %s935_s28 = scalar_lea.vmem %s934_s27, 256  ;;  %p936_p8 = scmp.lt.s32.totalorder %s251_s3, %s934_s27 }
  0x67   : > { %p931_p1 = pnand %p929_p9, %p917_p12  ;;  %p937_p10 = scmp.lt.s32.totalorder %s935_s28, %s928_s26 }
  0x69   : > { %p932_p2 = pneg %p931_p1  ;;  %p938_p0 = por %p937_p10, %p936_p8 }
  0x6b   : > { %p939_p5 = pnand %p938_p0, %p932_p2 }
  0x6d   : > { %942 = shalt.err (!%p939_p5)
}
  0x6e   : > { %729 = dma.hbm_to_vmem [thread:$0]  (!%p1370_p7), %s248_s8, 128, %s251_s3, %s238_s10  }
  0x6f   : > { %s114_s1 = sadd.s32 1, %s1087_s20  ;;  %p121_p11 = scmp.ne.s32.totalorder %s1087_s20, %s1083_s19 }
  0x70   : > { %p127_p6 = scmp.ne.s32.totalorder %s1083_s19, %s1079_s18  ;;  %s282_s26 = sand.u32 1, %s1087_s20  }
  0x71   : > { %p1584_p5 = scmp.eq.s32.totalorder %s1131_s6, 0  ;;  %p1585_p9 = scmp.eq.s32.totalorder %s1241_s7, 0 }
  0x72   : > { %s694_s21 = sshll.u32 %s282_s26, 3  ;;  %s1587_s9 = sshll.u32 %s1127_s30, 8 }
  0x73   : > { %p123_p12 = por %p121_p11, %p1584_p5  ;;  %p1388_p1 = por %p127_p6, %p1585_p9 }
  0x74   : > { %s1075_s14 = sadd.s32 128, %s1587_s9  ;;  %s284_s17 = scalar_lea.vmem [#allocation8], %s694_s21 }
  0x75   : > { %s1586_s16 = scalar_select %p1388_p1, 1, 0 }
  0x76   : > { %s296_s4 = sshll.u32 %s284_s17, 4  ;;  %p1588_p2 = scmp.eq.s32.totalorder %s1257_s12, 0  ;;  %s297_s4 = int_to_ptr.vmem [resolvable:$true] %s296_s4 }
  0x77   : > { %s294_s18 = scalar_lea.hbm %s1533_s2, %s1075_s14  ;;  %p1589_p7 = scmp.lt.s32.totalorder %s1131_s6, 4 }
  0x78   : > { %s1397_s27 = scalar_select %p1588_p2, %s1087_s20, %s114_s1  }
  0x79   : > { %p1404_p8 = pnand %p1589_p7, %p123_p12  ;;  %s943_s28 = scalar_lea.hbm %s294_s18, 128 }
  0x7a   : > { %p944_p10 = scmp.ne.s32.totalorder %s294_s18, %s943_s28  ;;  %s948_s26 = scalar_lea.hbm %s1533_s2, 512 }
  0x7b   : > { %p945_p0 = pneg %p1404_p8  ;;  %p950_p5 = scmp.lt.s32.totalorder %s948_s26, %s943_s28 }
  0x7d   : > { %p946_p11 = pnand %p945_p0, %p944_p10 }
  0x7f   : > { %p947_p6 = pneg %p946_p11 }
  0x81   : > { %p952_p9 = pnand %p950_p5, %p947_p6 }
  0x83   : > { %955 = shalt.err (!%p952_p9)
}
  0x84   : > { %s956_s21 = scalar_lea.vmem %s297_s4, 128  ;;  %s1138_s9 = smov [#allocation8]  }
  0x85   : > { %p957_p2 = scmp.ne.s32.totalorder %s297_s4, %s956_s21  ;;  %s961_s14 = sshll.u32 %s1138_s9, 4  ;;  %s962_s14 = int_to_ptr.vmem [resolvable:$false] %s961_s14 }
  0x86   : > { %s963_s17 = scalar_lea.vmem %s962_s14, 256  ;;  %p964_p4 = scmp.lt.s32.totalorder %s297_s4, %s962_s14 }
  0x87   : > { %p959_p12 = pnand %p957_p2, %p945_p0  ;;  %p965_p1 = scmp.lt.s32.totalorder %s963_s17, %s956_s21 }
  0x89   : > { %p960_p7 = pneg %p959_p12  ;;  %p966_p3 = por %p965_p1, %p964_p4 }
  0x8b   : > { %p967_p10 = pnand %p966_p3, %p960_p7 }
  0x8d   : > { %970 = shalt.err (!%p967_p10)
}
  0x8e   : > { %735 = dma.hbm_to_vmem [thread:$0]  (!%p1404_p8), %s294_s18, 128, %s297_s4, %s1302_s11  }
  0x8f   : > { %305 = sbr.rel (%p1314_p13) target bundleno = 339 (0x153), region = 40  ;;  %s1419_s3 = sand.u32 (!%p1314_p13), 1, %s1107_s25  }
  0x90   : > { %s698_s8 = sshll.u32 (!%p1314_p13), %s1419_s3, 3  ;;  %s308_s28 = scalar_lea.sflag (!%p1314_p13), [#allocation4], %s1419_s3 }
  0x91   : > { %s311_s12 = scalar_lea.vmem (!%p1314_p13), [#allocation3], %s698_s8  ;;  %p1591_p3 = scmp.ne.s32.totalorder (!%p1314_p13), %s1578_s22, 0 }
  0x94   : > { %1054 = dma.done.wait (%p1591_p3), %s308_s28, 128  }
  0x95   : > { %1056 = vsyncadd (%p1591_p3), %s308_s28, 4294967168  ;;  %s1592_s11 = sld [smem:[#allocation17_spill]]  ;;  %s316_s4 = sand.u32 1, %s1241_s7  }
  0x96   : > { %s1593_s5 = sld [smem:[#allocation23_spill]]  ;;  %s317_s1 = scalar_lea.sflag [#allocation7], %s316_s4 }
  0x9b   : > { %s318_s18 = sand.u32 1, %s1592_s11  }
  0x9c   : > { %s699_s10 = sshll.u32 %s318_s18, 3  ;;  %p1594_p13 = scmp.ne.s32.totalorder %s1593_s5, 0 }
  0x9d   : > { %s320_s26 = scalar_lea.vmem [#allocation6], %s699_s10 }
  0x9e   : > { %1058 = dma.done.wait (%p1594_p13), %s317_s1, 128  }
  0x9f   : > { %1060 = vsyncadd (%p1594_p13), %s317_s1, 4294967168  ;;  %s327_s21 = sand.u32 1, %s1083_s19   ;;  %p1595_p4 = scmp.ne.s32.totalorder %s1586_s16, 0 }
  0xa0   : > { %s700_s9 = sshll.u32 %s327_s21, 3 }
  0xa1   : > { %s329_s14 = scalar_lea.vmem [#allocation8], %s700_s9 }
  0xa2   : > { %1062 = dma.done.wait (%p1595_p4), %s317_s1, 128  }
  0xa3   : > { %1064 = vsyncadd (%p1595_p4), %s317_s1, 4294967168  ;;  %p1596_p1 = scmp.eq.s32.totalorder %s1241_s7, 0 }
  0xa5   : > { %1066 = dma.done.wait (%p1596_p1), [#allocation10], 256   ;;  %p1597_p8 = pmov %p1596_p1 }
  0xa6   : > { %s1598_s22 = sld [smem:[#allocation19_spill]]  ;;  %v423_v0 = vlaneseq  ;;  %v376_v2 = vld [vmem:[%s320_s26] sm:$0xff]  ;;  %v389_v3 = vld [vmem:[%s311_s12] sm:$0xff]  ;;  %s1139_s7 = smov 120   ;;  %vm449_vm0 = vcmask 1046528   ;;  %vm489_vm1 = vcmask 1045504  }
  0xa7   : > { %1068 = vsyncadd (%p1597_p8), [#allocation10], 4294967040  ;;  %v382_v4 = vld [vmem:[%s329_s14] sm:$0xff]  ;;  %390 = vst [vmem:[#allocation2 + $0x1] sm:$0xff] %v389_v3  ;;  %v414_v11 = vld [vmem:[#allocation9] sm:$0xff]  ;;  %s1140_s16 = smov 8  }
  0xa8   : > { %v424_v8 = vshrl.u32 %v423_v0, 7  ;;  %vm411_vm2 = vcmask 982016   ;;  %vm402_vm3 = vcmask 64512   ;;  %s1599_s18 = sld [smem:[#allocation28_spill]]  ;;  %v704_v60 = vld [vmem:[#allocation9 + $0x8] ss:$0 sm:$0xff] }
  0xa9   : > { %s1600_s10 = sld [smem:[#allocation20_spill]]  ;;  %s369_s9 = scalar_lea.vmem [#allocation11], %s698_s8 }
  0xaa   : > { %v457_v9 = vsub.s32 4, %v424_v8  ;;  %v497_v10 = vsub.s32 7, %v424_v8  ;;  %v425_v26 = vsub.s32 0, %v424_v8  ;;  %v431_v27 = vsub.s32 1, %v424_v8  ;;  %s538_s14 = sshll.u32 %s369_s9, 4  ;;  %p1602_p5 = scmp.ne.s32.totalorder %s1579_s15, 0  ;;  %s539_s14 = int_to_ptr.vmem [resolvable:$true] %s538_s14 }
  0xab   : > { %v437_v28 = vsub.s32 2, %v424_v8  ;;  %v443_v29 = vsub.s32 3, %v424_v8  ;;  %v470_v30 = vsub.s32 5, %v424_v8  ;;  %v483_v39 = vsub.s32 6, %v424_v8 }
  0xac   : > { %p377_p0 = scmp.gt.s32.totalorder %s1598_s22, 0  ;;  %p383_p11 = scmp.lt.s32.totalorder %s1598_s22, 1  ;;  %v458_v12 = vrot.slane %v414_v11, %v457_v9  ;;  %v498_v13 = vrot.slane %v414_v11, %v497_v10  ;;  %v426_v31 = vrot.slane %v414_v11, %v425_v26  ;;  %v432_v32 = vrot.slane %v414_v11, %v431_v27 }
  0xad   : > { %v438_v33 = vrot.slane %v414_v11, %v437_v28  ;;  %v444_v35 = vrot.slane %v414_v11, %v443_v29  ;;  %v471_v41 = vrot.slane %v414_v11, %v470_v30  ;;  %v484_v49 = vrot.slane %v414_v11, %v483_v39 }
  0xae   : > { %s378_s17 = scalar_select %p377_p0, 1, 0  ;;  %v703_v38 = vld [vmem:[%s1599_s18] ss:$0 sm:$0xff] }
  0xaf   : > { %s384_s28 = scalar_select %p383_p11, 1, 0 }
  0xb0   : > { %s379_s11 = scvt.s32.f32 %s378_s17  ;;  %s706_s1 = sshll.u32 %s1600_s10, 1 }
  0xb1   : > { %s385_s5 = scvt.s32.f32 %s384_s28  ;;  %s534_s26 = sadd.s32 %s1598_s22, %s706_s1 }
  0xb2   : > { %v380_v1 = vstv %s379_s11  ;;  %s707_s21 = sshll.u32 %s534_s26, 7  ;;  %s1601_s11 = sld [smem:[#allocation29_spill]] }
  0xb3   : > { %v386_v5 = vstv %s385_s5  ;;  %v381_v6 = vmul.f32 %v380_v1, %v376_v2  ;;  %s523_s22 = scalar_lea.sflag [#allocation5], %s1419_s3 }
  0xb4   : > { %v387_v7 = vmul.f32 %v386_v5, %v382_v4 }
  0xb5   : > { %388 = vst [vmem:[#allocation2 - $0x7] sm:$0x80] %v381_v6 }
  0xb6   : > { %391 = vst [vmem:[#allocation2 + $0x9] sm:$0x1] %v387_v7 }
  0xb8   : > { %s536_s5 = scalar_lea.hbm %s1601_s11, %s707_s21 }
  0xbc   : > { %v392_v14 = vld [vmem:[#allocation2] sm:$0xff] }
  0xbd   : > { %v393_v15 = vld [vmem:[#allocation2 + $0x8] sm:$0x3]  ;;  %405 = vrot.lane.b32.xlu1 %v392_v14, %s1139_s7  ;;  %396 = vrot.lane.b32.xlu0 %v392_v14, %s1140_s16  ;;  %v459_v18 = vmul.f32 %v458_v12, %v392_v14  ;;  %v499_v19 = vmul.f32 %v498_v13, %v392_v14  ;;  %v433_v43 = vmul.f32 %v432_v32, %v392_v14 }
  0xbe   : > { %v460_v16 = vmul.f32 %v458_v12, %v393_v15  ;;  %v500_v17 = vmul.f32 %v498_v13, %v393_v15 }
  0xbf   : > { %v463_v22 = vrot.slane %v459_v18, 1  ;;  %v503_v23 = vrot.slane %v499_v19, 2 }
  0xc0   : > { %v464_v20 = vrot.slane %v460_v16, 1  ;;  %v504_v21 = vrot.slane %v500_v17, 2 }
  0xc1   : > { %407 = vrot.lane.b32.xlu1 %v393_v15, %s1139_s7  ;;  %398 = vrot.lane.b32.xlu0 %v393_v15, %s1140_s16  ;;  %s971_s7 = scalar_lea.vmem %s539_s14, 128  ;;  %s1141_s16 = smov [#allocation11]  }
  0xc2   : > { %v465_v24 = vsel %vm449_vm0, %v463_v22, %v464_v20  ;;  %v505_v25 = vsel %vm489_vm1, %v503_v23, %v504_v21  ;;  %p972_p6 = scmp.ne.s32.totalorder %s539_s14, %s971_s7  ;;  %s975_s12 = sshll.u32 %s1141_s16, 4  ;;  %s976_s12 = int_to_ptr.vmem [resolvable:$false] %s975_s12 }
  0xc3   : > { %s977_s8 = scalar_lea.vmem %s976_s12, 256  ;;  %p978_p12 = scmp.lt.s32.totalorder %s539_s14, %s976_s12 }
  0xc4   : > { %p973_p9 = pnand %p972_p6, %p1602_p5  ;;  %p979_p7 = scmp.lt.s32.totalorder %s977_s8, %s971_s7 }
  0xc6   : > { %p974_p2 = pneg %p973_p9  ;;  %p980_p10 = por %p979_p7, %p978_p12 }
  0xc8   : > { %p981_p3 = pnand %p980_p10, %p974_p2 }
 0x12f   : > { %v406_v34 = vpop.permute.xlu1 %405  ;;  %v397_v36 = vpop.permute.xlu0 %396 }
 0x130   : > { %v412_v37 = vsel %vm411_vm2, %v406_v34, 0.0  ;;  %v403_v40 = vsel %vm402_vm3, 0.0, %v397_v36 }
 0x131   : > { %v427_v42 = vmul.f32 %v426_v31, %v403_v40  ;;  %v439_v44 = vmul.f32 %v438_v33, %v412_v37  ;;  %v445_v46 = vmul.f32 %v444_v35, %v403_v40  ;;  %v472_v52 = vmul.f32 %v471_v41, %v412_v37 }
 0x132   : > { %v485_v62 = vmul.f32 %v484_v49, %v403_v40  ;;  %v512_v2 = vmul.f32 %v704_v60, %v412_v37 }
 0x133   : > { %v428_v45 = vadd.f32 %v703_v38, %v427_v42  ;;  %v408_v47 = vpop.permute.xlu1 %407  ;;  %v399_v48 = vpop.permute.xlu0 %398  ;;  %v450_v57 = vrot.slane %v445_v46, 1  ;;  %v476_v61 = vrot.slane %v472_v52, 1 }
 0x134   : > { %v413_v50 = vsel %vm411_vm2, %v408_v47, 0.0  ;;  %v404_v51 = vsel %vm402_vm3, 0.0, %v399_v48  ;;  %v490_v6 = vrot.slane %v485_v62, 2  ;;  %v516_v9 = vrot.slane %v512_v2, 2 }
 0x135   : > { %v434_v53 = vadd.f32 %v433_v43, %v428_v45  ;;  %v473_v54 = vmul.f32 %v471_v41, %v413_v50  ;;  %v446_v55 = vmul.f32 %v444_v35, %v404_v51  ;;  %v486_v59 = vmul.f32 %v484_v49, %v404_v51 }
 0x136   : > { %v513_v3 = vmul.f32 %v704_v60, %v413_v50 }
 0x137   : > { %v440_v56 = vadd.f32 %v439_v44, %v434_v53  ;;  %v451_v58 = vrot.slane %v446_v55, 1  ;;  %v477_v63 = vrot.slane %v473_v54, 1  ;;  %v491_v4 = vrot.slane %v486_v59, 2 }
 0x138   : > { %v517_v10 = vrot.slane %v513_v3, 2 }
 0x139   : > { %v452_v0 = vsel %vm449_vm0, %v450_v57, %v451_v58  ;;  %v478_v7 = vsel %vm449_vm0, %v476_v61, %v477_v63  ;;  %v492_v11 = vsel %vm489_vm1, %v490_v6, %v491_v4 }
 0x13a   : > { %v454_v1 = vadd.f32 %v452_v0, %v440_v56  ;;  %v518_v14 = vsel %vm489_vm1, %v516_v9, %v517_v10 }
 0x13c   : > { %v467_v5 = vadd.f32 %v465_v24, %v454_v1 }
 0x13e   : > { %v480_v8 = vadd.f32 %v478_v7, %v467_v5 }
 0x140   : > { %v494_v12 = vadd.f32 %v492_v11, %v480_v8 }
 0x142   : > { %v507_v13 = vadd.f32 %v505_v25, %v494_v12 }
 0x144   : > { %v520_v15 = vadd.f32 %v518_v14, %v507_v13 }
 0x146   : > { %521 = vst [vmem:[%s369_s9] sm:$0xff] %v520_v15 }
 0x147   : > { %984 = shalt.err (!%p981_p3)
}
 0x148   : > { %s985_s4 = scalar_lea.hbm %s536_s5, 128  ;;  %s989_s10 = scalar_lea.hbm %s1601_s11, 512 }
 0x149   : > { %p986_p13 = scmp.ne.s32.totalorder %s536_s5, %s985_s4  ;;  %p990_p8 = scmp.lt.s32.totalorder %s536_s5, %s1601_s11 }
 0x14a   : > { %p991_p0 = scmp.lt.s32.totalorder %s989_s10, %s985_s4 }
 0x14b   : > { %p987_p4 = pnand %p986_p13, %p1602_p5 }
 0x14c   : > { %p992_p11 = por %p991_p0, %p990_p8 }
 0x14d   : > { %p988_p1 = pneg %p987_p4 }
 0x14f   : > { %p993_p6 = pnand %p992_p11, %p988_p1 }
 0x151   : > { %996 = shalt.err (!%p993_p6)
}
 0x152   : > { %720 = dma.vmem_to_hbm [thread:$0]  (%p1602_p5), %s539_s14, 128, %s536_s5, %s523_s22  }
 0x153 PF: > { %p743_p9 = scmp.ge.s32.totalorder %s1131_s6, 2  ;;  %s550_s21 = sand.u32 1, %s1103_s24  }
 0x154   : > { %p1603_p2 = scmp.ne.s32.totalorder %s1580_s13, 0  ;;  %s551_s9 = scalar_lea.sflag [#allocation5], %s550_s21 }
 0x156   : > { %p737_p12 = pnand %p743_p9, %p1603_p2 }
 0x158   : > { %p738_p7 = pneg %p737_p12 }
 0x15a   : > { %1070 = dma.done.wait (%p738_p7), %s551_s9, 128  }
 0x15b   : > { %1072 = vsyncadd (%p738_p7), %s551_s9, 4294967168  ;;  %s25_s6 = sadd.s32 1, %s1131_s6   ;;  %s1605_s21 = sld [smem:[#allocation17_spill]] }
 0x15c   : > { %p1484_p10 = scmp.ge.s32.totalorder %s25_s6, 6   ;;  %s1606_s15 = sld [smem:[#allocation24_spill]] }
 0x15d   : > { %s1607_s14 = sld [smem:[#allocation18_spill]]  ;;  %s1611_s18 = smov %s1083_s19 }
 0x15e   : > { %s1608_s26 = sld [smem:[#allocation25_spill]]  ;;  %s1612_s19 = smov %s1087_s20 }
 0x15f   : > { %s1609_s13 = sld [smem:[#allocation21_spill]]  ;;  %s1613_s20 = smov %s1397_s27 }
 0x160   : > { %s1610_s5 = sld [smem:[#allocation22_spill]]  ;;  %s1614_s22 = smov %s1099_s23 }
 0x161   : > { %s1616_s24 = smov %s1107_s25  ;;  %s1618_s27 = smov %s1123_s29 }
 0x162   : > { %s1615_s23 = smov %s1606_s15  ;;  %s1619_s28 = smov %s1127_s30 }
 0x163   : > { %s1617_s25 = smov %s1607_s14  ;;  %24 = sbr.rel (!%p1484_p10) target bundleno = 18 (0x12), region = 113 }
 0x165   : > { %s1620_s29 = smov %s1609_s13 }
 0x166   : > { %s1621_s30 = smov %s1610_s5 }
 0x168   :  { %556 = vsyncpa [#allocation4], 1 }
 0x169   :  { %558 = vsyncpa [#allocation4 + $0x1], 1 }
 0x16a   :  { %559 = vsyncpa [#allocation7], 1 }
 0x16b   :  { %561 = vsyncpa [#allocation7 + $0x1], 1 }
 0x16c   :  { %562 = vsyncpa [#allocation10], 1 }
 0x16d   :  { %563 = vsyncpa [#allocation5], 1 }
 0x16e   :  { %565 = vsyncpa [#allocation5 + $0x1], 1 }

</bundles_post_ra>
